<compile_context>
chip_gen: v5e
topology: v5e:2x2
jax: 0.10.0
libtpu: 0.0.40
codegen_flags: <defaults>
</compile_context>

<pallas_src>
import functools

import jax
import jax.numpy as jnp
import numpy as np
from jax.experimental import pallas as pl
from jax.experimental.pallas import tpu as pltpu

_LANES = 128
_SUBLANES = 8


def _round_up(x, m):
    return (x + m - 1) // m * m


def _gdl_kernel(inp_ref, tgt_ref, intersect_ref, denom_ref,
                prod_acc, inp_acc, tgt_acc, bgp_acc, bgi_acc, bgt_acc,
                *, epsilon, include_background, valid_pixels, has_padding):
    """One (batch n, spatial tile s) reduction step.

    inp_ref / tgt_ref       : (1, C, rows_tile, 128) VMEM tiles (native dtype)
    intersect_ref/denom_ref : (1, 1, 1) per-batch outputs (written on last s)
    prod_acc/inp_acc/tgt_acc: (C, 128) f32 per-class, per-lane partial sums
    bgp_acc/bgi_acc/bgt_acc : (1, 128) f32 background partial sums
    """
    s = pl.program_id(1)

    @pl.when(s == 0)
    def _init():
        prod_acc[...] = jnp.zeros_like(prod_acc)
        inp_acc[...] = jnp.zeros_like(inp_acc)
        tgt_acc[...] = jnp.zeros_like(tgt_acc)
        if include_background:
            bgp_acc[...] = jnp.zeros_like(bgp_acc)
            bgi_acc[...] = jnp.zeros_like(bgi_acc)
            bgt_acc[...] = jnp.zeros_like(bgt_acc)

    inp = inp_ref[0].astype(jnp.float32)   # (C, rows, 128)
    tgt = tgt_ref[0].astype(jnp.float32)

    # Per-class, per-lane partial sums; cross-lane reduce deferred to last step.
    prod_acc[...] += jnp.sum(inp * tgt, axis=1)   # (C, 128)
    inp_acc[...] += jnp.sum(inp, axis=1)          # (C, 128)
    tgt_acc[...] += jnp.sum(tgt, axis=1)          # (C, 128)

    if include_background:
        # Background channel: 1 where the per-pixel channel-sum == 0.
        inp_csum = jnp.sum(inp, axis=0)   # (rows, 128) — per-vreg VPU adds
        tgt_csum = jnp.sum(tgt, axis=0)
        i_bg = inp_csum == 0.0
        t_bg = tgt_csum == 0.0
        if has_padding:
            # Exclude padded pixels (they would look like background).
            rows = inp.shape[1]
            row_ids = jax.lax.broadcasted_iota(jnp.int32, (rows, _LANES), 0)
            lane_ids = jax.lax.broadcasted_iota(jnp.int32, (rows, _LANES), 1)
            gidx = (s * rows + row_ids) * _LANES + lane_ids
            valid = gidx < valid_pixels
            i_bg = jnp.logical_and(i_bg, valid)
            t_bg = jnp.logical_and(t_bg, valid)
        ib = i_bg.astype(jnp.float32)
        tb = t_bg.astype(jnp.float32)
        bgp_acc[...] += jnp.sum(ib * tb, axis=0, keepdims=True)   # (1, 128)
        bgi_acc[...] += jnp.sum(ib, axis=0, keepdims=True)
        bgt_acc[...] += jnp.sum(tb, axis=0, keepdims=True)

    @pl.when(s == pl.num_programs(1) - 1)
    def _finalize():
        ts = jnp.sum(tgt_acc[...], axis=1, keepdims=True)   # (C, 1)
        ps = jnp.sum(prod_acc[...], axis=1, keepdims=True)  # (C, 1)
        xs = jnp.sum(inp_acc[...], axis=1, keepdims=True)   # (C, 1)
        w = 1.0 / jnp.maximum(ts * ts, epsilon)              # class weights
        intersect = jnp.sum(ps * w)
        denom = jnp.sum((xs + ts) * w)    # sum(inp)+sum(tgt) == sum(inp+tgt)
        if include_background:
            pb = jnp.sum(bgp_acc[...])
            ibs = jnp.sum(bgi_acc[...])
            tbs = jnp.sum(bgt_acc[...])
            w_bg = 1.0 / jnp.maximum(tbs * tbs, epsilon)
            intersect = intersect + pb * w_bg
            denom = denom + (ibs + tbs) * w_bg
        intersect_ref[...] = jnp.full(intersect_ref.shape, intersect, jnp.float32)
        denom_ref[...] = jnp.full(denom_ref.shape, denom, jnp.float32)


def generalized_dice_loss(inp, tgt, epsilon=1e-5, include_background=True):
    """Pallas implementation of GeneralizedDiceLoss.forward (N, C, spatial...)."""
    if inp.shape != tgt.shape:
        raise ValueError(
            "Target size ({}) must be the same as input size ({})".format(
                tgt.shape, inp.shape))
    N, C = int(inp.shape[0]), int(inp.shape[1])
    P = int(np.prod(inp.shape[2:]))

    # ---- lane-dense spatial tiling: (N, C, P) -> (N, C, R_pad, 128) ----
    R = -(-P // _LANES)
    # Double-buffered input blocks (2 inputs x 2 buffers); ~16 MiB fits every
    # chip (well under the v7x 64 MiB physical VMEM) while tiles stay large
    # enough to amortize per-grid-step overhead and saturate HBM.
    bytes_per_row = C * _LANES * (inp.dtype.itemsize + tgt.dtype.itemsize) * 2
    budget = 16 * 1024 * 1024
    max_rows = max(_SUBLANES, budget // bytes_per_row // _SUBLANES * _SUBLANES)
    rows_tile = int(min(max_rows, _round_up(R, _SUBLANES)))
    R_pad = _round_up(R, rows_tile)
    num_s = R_pad // rows_tile
    P_pad = R_pad * _LANES

    inp2 = inp.reshape(N, C, P)
    tgt2 = tgt.reshape(N, C, P)
    if P_pad != P:
        pad = ((0, 0), (0, 0), (0, P_pad - P))
        inp2 = jnp.pad(inp2, pad)
        tgt2 = jnp.pad(tgt2, pad)
    inp2 = inp2.reshape(N, C, R_pad, _LANES)   # native dtype kept in HBM
    tgt2 = tgt2.reshape(N, C, R_pad, _LANES)

    kernel = functools.partial(
        _gdl_kernel,
        epsilon=float(epsilon),
        include_background=bool(include_background),
        valid_pixels=P,
        has_padding=(P_pad != P),
    )

    intersects, denoms = pl.pallas_call(
        kernel,
        out_shape=(jax.ShapeDtypeStruct((N, 1, 1), jnp.float32),
                   jax.ShapeDtypeStruct((N, 1, 1), jnp.float32)),
        grid_spec=pltpu.PrefetchScalarGridSpec(
            num_scalar_prefetch=0,
            grid=(N, num_s),
            in_specs=[
                pl.BlockSpec((1, C, rows_tile, _LANES), lambda n, s: (n, 0, s, 0)),
                pl.BlockSpec((1, C, rows_tile, _LANES), lambda n, s: (n, 0, s, 0)),
            ],
            out_specs=[
                pl.BlockSpec((1, 1, 1), lambda n, s: (n, 0, 0)),
                pl.BlockSpec((1, 1, 1), lambda n, s: (n, 0, 0)),
            ],
            scratch_shapes=[
                pltpu.VMEM((C, _LANES), jnp.float32),
                pltpu.VMEM((C, _LANES), jnp.float32),
                pltpu.VMEM((C, _LANES), jnp.float32),
                pltpu.VMEM((1, _LANES), jnp.float32),
                pltpu.VMEM((1, _LANES), jnp.float32),
                pltpu.VMEM((1, _LANES), jnp.float32),
            ],
        ),
        compiler_params=pltpu.CompilerParams(
            dimension_semantics=("parallel", "arbitrary"),
            vmem_limit_bytes=48 * 1024 * 1024,
        ),
    )(inp2, tgt2)

    # Tiny combine in plain JAX (lets the N axis stay megacore-parallel).
    intersect = jnp.sum(intersects)
    denom = jnp.sum(denoms)
    return -2.0 * intersect / jnp.maximum(denom, jnp.float32(epsilon))


def _reference(inp, tgt, epsilon=1e-5, include_background=True):
    """Plain-JAX reference matching the PyTorch module semantics."""
    inp = inp.astype(jnp.float32)
    tgt = tgt.astype(jnp.float32)
    if include_background:
        ib = (inp.sum(axis=1, keepdims=True) == 0).astype(jnp.float32)
        tb = (tgt.sum(axis=1, keepdims=True) == 0).astype(jnp.float32)
        inp = jnp.concatenate([inp, ib], axis=1)
        tgt = jnp.concatenate([tgt, tb], axis=1)
    axes = tuple(range(2, tgt.ndim))
    ts = tgt.sum(axis=axes)
    w = 1.0 / jnp.maximum(ts * ts, epsilon)
    intersect = ((inp * tgt).sum(axis=axes) * w).sum()
    denom = ((inp + tgt).sum(axis=axes) * w).sum()
    return -2.0 * intersect / jnp.maximum(denom, epsilon)


if __name__ == "__main__":
    # GeneralizedDiceLoss has no learned parameters (only epsilon / flag).
    key = jax.random.PRNGKey(0)
    k1, k2 = jax.random.split(key)

    N, C, H, W = 2, 4, 16, 16
    # Predictions: sparse non-negative values (so some pixels hit the
    # "channel sum == 0" background condition).
    u = jax.random.uniform(k1, (N, C, H, W), dtype=jnp.float32)
    x = jnp.where(u > 0.6, u, 0.0)
    # Targets: binary one-hot-ish masks.
    t = (jax.random.uniform(k2, (N, C, H, W), dtype=jnp.float32) > 0.7).astype(
        jnp.float32
    )

    loss = generalized_dice_loss(x, t, epsilon=1e-5, include_background=True)
    loss = jax.block_until_ready(loss)

    ref = jax.block_until_ready(_reference(x, t, epsilon=1e-5, include_background=True))
    np.testing.assert_allclose(np.asarray(loss), np.asarray(ref), rtol=1e-5, atol=1e-5)

    print("KERNEL_OK")
</pallas_src>

<mosaic_0001>
module attributes {stable_mosaic.version = 11 : i64} {
  func.func @_gdl_kernel(%arg0: i32, %arg1: i32, %arg2: memref<1x4x8x128xf32, #tpu.memory_space<vmem>>, %arg3: memref<1x4x8x128xf32, #tpu.memory_space<vmem>>, %arg4: memref<1x1x1xf32, #tpu.memory_space<vmem>>, %arg5: memref<1x1x1xf32, #tpu.memory_space<vmem>>, %arg6: memref<4x128xf32, #tpu.memory_space<vmem>>, %arg7: memref<4x128xf32, #tpu.memory_space<vmem>>, %arg8: memref<4x128xf32, #tpu.memory_space<vmem>>, %arg9: memref<1x128xf32, #tpu.memory_space<vmem>>, %arg10: memref<1x128xf32, #tpu.memory_space<vmem>>, %arg11: memref<1x128xf32, #tpu.memory_space<vmem>>) attributes {dimension_semantics = [#tpu.dimension_semantics<parallel>, #tpu.dimension_semantics<arbitrary>], iteration_bounds = array<i64: 2, 1>, scalar_prefetch = 0 : i64, scratch_operands = 6 : i64, tpu.core_type = #tpu.core_type<tc>, window_params = [{transform_indices = @transform_0, window_bounds = array<i64: 1, 4, 8, 128>}, {transform_indices = @transform_1, window_bounds = array<i64: 1, 4, 8, 128>}, {transform_indices = @transform_2, window_bounds = array<i64: 1, 1, 1>}, {transform_indices = @transform_3, window_bounds = array<i64: 1, 1, 1>}]} {
    %c0_i32 = arith.constant 0 : i32
    %0 = arith.cmpi eq, %arg1, %c0_i32 : i32
    %1 = arith.extui %0 : i1 to i32
    %c0_i32_0 = arith.constant 0 : i32
    %2 = arith.cmpi ne, %1, %c0_i32_0 : i32
    scf.if %2 {
      %cst_43 = arith.constant 0.000000e+00 : f32
      %61 = vector.broadcast %cst_43 : f32 to vector<4x128xf32>
      %c0_44 = arith.constant 0 : index
      %c0_45 = arith.constant 0 : index
      %62 = vector.load %arg6[%c0_44, %c0_45] : memref<4x128xf32, #tpu.memory_space<vmem>>, vector<4x128xf32>
      tpu.vector_store %arg6[%c0_44, %c0_45], %61 {strides = array<i32>} : memref<4x128xf32, #tpu.memory_space<vmem>>, vector<4x128xf32>,
      %cst_46 = arith.constant 0.000000e+00 : f32
      %63 = vector.broadcast %cst_46 : f32 to vector<4x128xf32>
      %c0_47 = arith.constant 0 : index
      %c0_48 = arith.constant 0 : index
      %64 = vector.load %arg7[%c0_47, %c0_48] : memref<4x128xf32, #tpu.memory_space<vmem>>, vector<4x128xf32>
      tpu.vector_store %arg7[%c0_47, %c0_48], %63 {strides = array<i32>} : memref<4x128xf32, #tpu.memory_space<vmem>>, vector<4x128xf32>,
      %cst_49 = arith.constant 0.000000e+00 : f32
      %65 = vector.broadcast %cst_49 : f32 to vector<4x128xf32>
      %c0_50 = arith.constant 0 : index
      %c0_51 = arith.constant 0 : index
      %66 = vector.load %arg8[%c0_50, %c0_51] : memref<4x128xf32, #tpu.memory_space<vmem>>, vector<4x128xf32>
      tpu.vector_store %arg8[%c0_50, %c0_51], %65 {strides = array<i32>} : memref<4x128xf32, #tpu.memory_space<vmem>>, vector<4x128xf32>,
      %cst_52 = arith.constant 0.000000e+00 : f32
      %67 = vector.broadcast %cst_52 : f32 to vector<1x128xf32>
      %c0_53 = arith.constant 0 : index
      %c0_54 = arith.constant 0 : index
      %68 = vector.load %arg9[%c0_53, %c0_54] : memref<1x128xf32, #tpu.memory_space<vmem>>, vector<1x128xf32>
      tpu.vector_store %arg9[%c0_53, %c0_54], %67 {strides = array<i32>} : memref<1x128xf32, #tpu.memory_space<vmem>>, vector<1x128xf32>,
      %cst_55 = arith.constant 0.000000e+00 : f32
      %69 = vector.broadcast %cst_55 : f32 to vector<1x128xf32>
      %c0_56 = arith.constant 0 : index
      %c0_57 = arith.constant 0 : index
      %70 = vector.load %arg10[%c0_56, %c0_57] : memref<1x128xf32, #tpu.memory_space<vmem>>, vector<1x128xf32>
      tpu.vector_store %arg10[%c0_56, %c0_57], %69 {strides = array<i32>} : memref<1x128xf32, #tpu.memory_space<vmem>>, vector<1x128xf32>,
      %cst_58 = arith.constant 0.000000e+00 : f32
      %71 = vector.broadcast %cst_58 : f32 to vector<1x128xf32>
      %c0_59 = arith.constant 0 : index
      %c0_60 = arith.constant 0 : index
      %72 = vector.load %arg11[%c0_59, %c0_60] : memref<1x128xf32, #tpu.memory_space<vmem>>, vector<1x128xf32>
      tpu.vector_store %arg11[%c0_59, %c0_60], %71 {strides = array<i32>} : memref<1x128xf32, #tpu.memory_space<vmem>>, vector<1x128xf32>,
    } else {
    }
    %c0 = arith.constant 0 : index
    %c0_1 = arith.constant 0 : index
    %c0_2 = arith.constant 0 : index
    %c0_3 = arith.constant 0 : index
    %3 = vector.load %arg2[%c0, %c0_1, %c0_2, %c0_3] : memref<1x4x8x128xf32, #tpu.memory_space<vmem>>, vector<1x4x8x128xf32>
    %4 = vector.shape_cast %3 : vector<1x4x8x128xf32> to vector<4x8x128xf32>
    %c0_4 = arith.constant 0 : index
    %c0_5 = arith.constant 0 : index
    %c0_6 = arith.constant 0 : index
    %c0_7 = arith.constant 0 : index
    %5 = vector.load %arg3[%c0_4, %c0_5, %c0_6, %c0_7] : memref<1x4x8x128xf32, #tpu.memory_space<vmem>>, vector<1x4x8x128xf32>
    %6 = vector.shape_cast %5 : vector<1x4x8x128xf32> to vector<4x8x128xf32>
    %c0_8 = arith.constant 0 : index
    %c0_9 = arith.constant 0 : index
    %7 = vector.load %arg6[%c0_8, %c0_9] : memref<4x128xf32, #tpu.memory_space<vmem>>, vector<4x128xf32>
    %8 = arith.mulf %4, %6 : vector<4x8x128xf32>
    %cst = arith.constant dense<0.000000e+00> : vector<4x128xf32>
    %9 = vector.multi_reduction <add>, %8, %cst [1] : vector<4x8x128xf32> to vector<4x128xf32>
    %10 = arith.addf %7, %9 : vector<4x128xf32>
    %c0_10 = arith.constant 0 : index
    %c0_11 = arith.constant 0 : index
    %11 = vector.load %arg6[%c0_10, %c0_11] : memref<4x128xf32, #tpu.memory_space<vmem>>, vector<4x128xf32>
    tpu.vector_store %arg6[%c0_10, %c0_11], %10 {strides = array<i32>} : memref<4x128xf32, #tpu.memory_space<vmem>>, vector<4x128xf32>,
    %c0_12 = arith.constant 0 : index
    %c0_13 = arith.constant 0 : index
    %12 = vector.load %arg7[%c0_12, %c0_13] : memref<4x128xf32, #tpu.memory_space<vmem>>, vector<4x128xf32>
    %cst_14 = arith.constant dense<0.000000e+00> : vector<4x128xf32>
    %13 = vector.multi_reduction <add>, %4, %cst_14 [1] : vector<4x8x128xf32> to vector<4x128xf32>
    %14 = arith.addf %12, %13 : vector<4x128xf32>
    %c0_15 = arith.constant 0 : index
    %c0_16 = arith.constant 0 : index
    %15 = vector.load %arg7[%c0_15, %c0_16] : memref<4x128xf32, #tpu.memory_space<vmem>>, vector<4x128xf32>
    tpu.vector_store %arg7[%c0_15, %c0_16], %14 {strides = array<i32>} : memref<4x128xf32, #tpu.memory_space<vmem>>, vector<4x128xf32>,
    %c0_17 = arith.constant 0 : index
    %c0_18 = arith.constant 0 : index
    %16 = vector.load %arg8[%c0_17, %c0_18] : memref<4x128xf32, #tpu.memory_space<vmem>>, vector<4x128xf32>
    %cst_19 = arith.constant dense<0.000000e+00> : vector<4x128xf32>
    %17 = vector.multi_reduction <add>, %6, %cst_19 [1] : vector<4x8x128xf32> to vector<4x128xf32>
    %18 = arith.addf %16, %17 : vector<4x128xf32>
    %c0_20 = arith.constant 0 : index
    %c0_21 = arith.constant 0 : index
    %19 = vector.load %arg8[%c0_20, %c0_21] : memref<4x128xf32, #tpu.memory_space<vmem>>, vector<4x128xf32>
    tpu.vector_store %arg8[%c0_20, %c0_21], %18 {strides = array<i32>} : memref<4x128xf32, #tpu.memory_space<vmem>>, vector<4x128xf32>,
    %cst_22 = arith.constant dense<0.000000e+00> : vector<8x128xf32>
    %20 = vector.multi_reduction <add>, %4, %cst_22 [0] : vector<4x8x128xf32> to vector<8x128xf32>
    %cst_23 = arith.constant dense<0.000000e+00> : vector<8x128xf32>
    %21 = vector.multi_reduction <add>, %6, %cst_23 [0] : vector<4x8x128xf32> to vector<8x128xf32>
    %cst_24 = arith.constant 0.000000e+00 : f32
    %22 = vector.broadcast %cst_24 : f32 to vector<8x128xf32>
    %23 = arith.cmpf oeq, %20, %22 : vector<8x128xf32>
    %cst_25 = arith.constant 0.000000e+00 : f32
    %24 = vector.broadcast %cst_25 : f32 to vector<8x128xf32>
    %25 = arith.cmpf oeq, %21, %24 : vector<8x128xf32>
    %26 = tpu.iota {dimensions = array<i32: 0>} : vector<8x128xi32>
    %27 = tpu.iota {dimensions = array<i32: 1>} : vector<8x128xi32>
    %c8_i32 = arith.constant 8 : i32
    %28 = arith.muli %arg1, %c8_i32 : i32
    %29 = vector.broadcast %28 : i32 to vector<8x128xi32>
    %30 = arith.addi %29, %26 : vector<8x128xi32>
    %c128_i32 = arith.constant 128 : i32
    %31 = vector.broadcast %c128_i32 : i32 to vector<8x128xi32>
    %32 = arith.muli %30, %31 : vector<8x128xi32>
    %33 = arith.addi %32, %27 : vector<8x128xi32>
    %c256_i32 = arith.constant 256 : i32
    %34 = vector.broadcast %c256_i32 : i32 to vector<8x128xi32>
    %35 = arith.cmpi slt, %33, %34 : vector<8x128xi32>
    %36 = arith.andi %23, %35 : vector<8x128xi1>
    %37 = arith.andi %25, %35 : vector<8x128xi1>
    %38 = arith.extui %36 : vector<8x128xi1> to vector<8x128xi32>
    %39 = arith.sitofp %38 : vector<8x128xi32> to vector<8x128xf32>
    %40 = arith.extui %37 : vector<8x128xi1> to vector<8x128xi32>
    %41 = arith.sitofp %40 : vector<8x128xi32> to vector<8x128xf32>
    %c0_26 = arith.constant 0 : index
    %c0_27 = arith.constant 0 : index
    %42 = vector.load %arg9[%c0_26, %c0_27] : memref<1x128xf32, #tpu.memory_space<vmem>>, vector<1x128xf32>
    %43 = arith.mulf %39, %41 : vector<8x128xf32>
    %cst_28 = arith.constant dense<0.000000e+00> : vector<128xf32>
    %44 = vector.multi_reduction <add>, %43, %cst_28 [0] : vector<8x128xf32> to vector<128xf32>
    %45 = vector.shape_cast %44 : vector<128xf32> to vector<1x128xf32>
    %46 = arith.addf %42, %45 : vector<1x128xf32>
    %c0_29 = arith.constant 0 : index
    %c0_30 = arith.constant 0 : index
    %47 = vector.load %arg9[%c0_29, %c0_30] : memref<1x128xf32, #tpu.memory_space<vmem>>, vector<1x128xf32>
    tpu.vector_store %arg9[%c0_29, %c0_30], %46 {strides = array<i32>} : memref<1x128xf32, #tpu.memory_space<vmem>>, vector<1x128xf32>,
    %c0_31 = arith.constant 0 : index
    %c0_32 = arith.constant 0 : index
    %48 = vector.load %arg10[%c0_31, %c0_32] : memref<1x128xf32, #tpu.memory_space<vmem>>, vector<1x128xf32>
    %cst_33 = arith.constant dense<0.000000e+00> : vector<128xf32>
    %49 = vector.multi_reduction <add>, %39, %cst_33 [0] : vector<8x128xf32> to vector<128xf32>
    %50 = vector.shape_cast %49 : vector<128xf32> to vector<1x128xf32>
    %51 = arith.addf %48, %50 : vector<1x128xf32>
    %c0_34 = arith.constant 0 : index
    %c0_35 = arith.constant 0 : index
    %52 = vector.load %arg10[%c0_34, %c0_35] : memref<1x128xf32, #tpu.memory_space<vmem>>, vector<1x128xf32>
    tpu.vector_store %arg10[%c0_34, %c0_35], %51 {strides = array<i32>} : memref<1x128xf32, #tpu.memory_space<vmem>>, vector<1x128xf32>,
    %c0_36 = arith.constant 0 : index
    %c0_37 = arith.constant 0 : index
    %53 = vector.load %arg11[%c0_36, %c0_37] : memref<1x128xf32, #tpu.memory_space<vmem>>, vector<1x128xf32>
    %cst_38 = arith.constant dense<0.000000e+00> : vector<128xf32>
    %54 = vector.multi_reduction <add>, %41, %cst_38 [0] : vector<8x128xf32> to vector<128xf32>
    %55 = vector.shape_cast %54 : vector<128xf32> to vector<1x128xf32>
    %56 = arith.addf %53, %55 : vector<1x128xf32>
    %c0_39 = arith.constant 0 : index
    %c0_40 = arith.constant 0 : index
    %57 = vector.load %arg11[%c0_39, %c0_40] : memref<1x128xf32, #tpu.memory_space<vmem>>, vector<1x128xf32>
    tpu.vector_store %arg11[%c0_39, %c0_40], %56 {strides = array<i32>} : memref<1x128xf32, #tpu.memory_space<vmem>>, vector<1x128xf32>,
    %c0_i32_41 = arith.constant 0 : i32
    %58 = arith.cmpi eq, %arg1, %c0_i32_41 : i32
    %59 = arith.extui %58 : i1 to i32
    %c0_i32_42 = arith.constant 0 : i32
    %60 = arith.cmpi ne, %59, %c0_i32_42 : i32
    scf.if %60 {
      %c0_43 = arith.constant 0 : index
      %c0_44 = arith.constant 0 : index
      %61 = vector.load %arg8[%c0_43, %c0_44] : memref<4x128xf32, #tpu.memory_space<vmem>>, vector<4x128xf32>
      %cst_45 = arith.constant dense<0.000000e+00> : vector<4xf32>
      %62 = vector.multi_reduction <add>, %61, %cst_45 [1] : vector<4x128xf32> to vector<4xf32>
      %63 = vector.shape_cast %62 : vector<4xf32> to vector<4x1xf32>
      %c0_46 = arith.constant 0 : index
      %c0_47 = arith.constant 0 : index
      %64 = vector.load %arg6[%c0_46, %c0_47] : memref<4x128xf32, #tpu.memory_space<vmem>>, vector<4x128xf32>
      %cst_48 = arith.constant dense<0.000000e+00> : vector<4xf32>
      %65 = vector.multi_reduction <add>, %64, %cst_48 [1] : vector<4x128xf32> to vector<4xf32>
      %66 = vector.shape_cast %65 : vector<4xf32> to vector<4x1xf32>
      %c0_49 = arith.constant 0 : index
      %c0_50 = arith.constant 0 : index
      %67 = vector.load %arg7[%c0_49, %c0_50] : memref<4x128xf32, #tpu.memory_space<vmem>>, vector<4x128xf32>
      %cst_51 = arith.constant dense<0.000000e+00> : vector<4xf32>
      %68 = vector.multi_reduction <add>, %67, %cst_51 [1] : vector<4x128xf32> to vector<4xf32>
      %69 = vector.shape_cast %68 : vector<4xf32> to vector<4x1xf32>
      %70 = arith.mulf %63, %63 : vector<4x1xf32>
      %cst_52 = arith.constant 9.99999974E-6 : f32
      %71 = vector.broadcast %cst_52 : f32 to vector<4x1xf32>
      %72 = arith.maximumf %70, %71 : vector<4x1xf32>
      %cst_53 = arith.constant 1.000000e+00 : f32
      %73 = vector.broadcast %cst_53 : f32 to vector<4x1xf32>
      %74 = arith.divf %73, %72 : vector<4x1xf32>
      %75 = arith.mulf %66, %74 : vector<4x1xf32>
      %76 = vector.shape_cast %75 : vector<4x1xf32> to vector<1x4x1xf32>
      %cst_54 = arith.constant dense<0.000000e+00> : vector<1xf32>
      %77 = vector.multi_reduction <add>, %76, %cst_54 [1, 2] : vector<1x4x1xf32> to vector<1xf32>
      %78 = vector.shape_cast %77 : vector<1xf32> to vector<1x1x1xf32>
      %79 = vector.extract %78[0, 0, 0] : f32 from vector<1x1x1xf32>
      %80 = arith.addf %69, %63 : vector<4x1xf32>
      %81 = arith.mulf %80, %74 : vector<4x1xf32>
      %82 = vector.shape_cast %81 : vector<4x1xf32> to vector<1x4x1xf32>
      %cst_55 = arith.constant dense<0.000000e+00> : vector<1xf32>
      %83 = vector.multi_reduction <add>, %82, %cst_55 [1, 2] : vector<1x4x1xf32> to vector<1xf32>
      %84 = vector.shape_cast %83 : vector<1xf32> to vector<1x1x1xf32>
      %85 = vector.extract %84[0, 0, 0] : f32 from vector<1x1x1xf32>
      %c0_56 = arith.constant 0 : index
      %c0_57 = arith.constant 0 : index
      %86 = vector.load %arg9[%c0_56, %c0_57] : memref<1x128xf32, #tpu.memory_space<vmem>>, vector<1x128xf32>
      %87 = vector.shape_cast %86 : vector<1x128xf32> to vector<1x1x128xf32>
      %cst_58 = arith.constant dense<0.000000e+00> : vector<1xf32>
      %88 = vector.multi_reduction <add>, %87, %cst_58 [1, 2] : vector<1x1x128xf32> to vector<1xf32>
      %89 = vector.shape_cast %88 : vector<1xf32> to vector<1x1x1xf32>
      %90 = vector.extract %89[0, 0, 0] : f32 from vector<1x1x1xf32>
      %c0_59 = arith.constant 0 : index
      %c0_60 = arith.constant 0 : index
      %91 = vector.load %arg10[%c0_59, %c0_60] : memref<1x128xf32, #tpu.memory_space<vmem>>, vector<1x128xf32>
      %92 = vector.shape_cast %91 : vector<1x128xf32> to vector<1x1x128xf32>
      %cst_61 = arith.constant dense<0.000000e+00> : vector<1xf32>
      %93 = vector.multi_reduction <add>, %92, %cst_61 [1, 2] : vector<1x1x128xf32> to vector<1xf32>
      %94 = vector.shape_cast %93 : vector<1xf32> to vector<1x1x1xf32>
      %95 = vector.extract %94[0, 0, 0] : f32 from vector<1x1x1xf32>
      %c0_62 = arith.constant 0 : index
      %c0_63 = arith.constant 0 : index
      %96 = vector.load %arg11[%c0_62, %c0_63] : memref<1x128xf32, #tpu.memory_space<vmem>>, vector<1x128xf32>
      %97 = vector.shape_cast %96 : vector<1x128xf32> to vector<1x1x128xf32>
      %cst_64 = arith.constant dense<0.000000e+00> : vector<1xf32>
      %98 = vector.multi_reduction <add>, %97, %cst_64 [1, 2] : vector<1x1x128xf32> to vector<1xf32>
      %99 = vector.shape_cast %98 : vector<1xf32> to vector<1x1x1xf32>
      %100 = vector.extract %99[0, 0, 0] : f32 from vector<1x1x1xf32>
      %101 = arith.mulf %100, %100 : f32
      %cst_65 = arith.constant 9.99999974E-6 : f32
      %102 = arith.maximumf %101, %cst_65 : f32
      %cst_66 = arith.constant 1.000000e+00 : f32
      %103 = arith.divf %cst_66, %102 : f32
      %104 = arith.mulf %90, %103 : f32
      %105 = arith.addf %79, %104 : f32
      %106 = arith.addf %95, %100 : f32
      %107 = arith.mulf %106, %103 : f32
      %108 = arith.addf %85, %107 : f32
      %109 = vector.broadcast %105 : f32 to vector<1x1x1xf32>
      %c0_67 = arith.constant 0 : index
      %c0_68 = arith.constant 0 : index
      %c0_69 = arith.constant 0 : index
      %110 = vector.load %arg4[%c0_67, %c0_68, %c0_69] : memref<1x1x1xf32, #tpu.memory_space<vmem>>, vector<1x1x1xf32>
      tpu.vector_store %arg4[%c0_67, %c0_68, %c0_69], %109 {strides = array<i32>} : memref<1x1x1xf32, #tpu.memory_space<vmem>>, vector<1x1x1xf32>,
      %111 = vector.broadcast %108 : f32 to vector<1x1x1xf32>
      %c0_70 = arith.constant 0 : index
      %c0_71 = arith.constant 0 : index
      %c0_72 = arith.constant 0 : index
      %112 = vector.load %arg5[%c0_70, %c0_71, %c0_72] : memref<1x1x1xf32, #tpu.memory_space<vmem>>, vector<1x1x1xf32>
      tpu.vector_store %arg5[%c0_70, %c0_71, %c0_72], %111 {strides = array<i32>} : memref<1x1x1xf32, #tpu.memory_space<vmem>>, vector<1x1x1xf32>,
    } else {
    }
    return
  }
  func.func @transform_0(%arg0: i32, %arg1: i32) -> (i32, i32, i32, i32) {
    %c0_i32 = arith.constant 0 : i32
    %c0_i32_0 = arith.constant 0 : i32
    %c0_i32_1 = arith.constant 0 : i32
    return %arg0, %c0_i32, %arg1, %c0_i32_0 : i32, i32, i32, i32
  }
  func.func @transform_1(%arg0: i32, %arg1: i32) -> (i32, i32, i32, i32) {
    %c0_i32 = arith.constant 0 : i32
    %c0_i32_0 = arith.constant 0 : i32
    %c0_i32_1 = arith.constant 0 : i32
    return %arg0, %c0_i32, %arg1, %c0_i32_0 : i32, i32, i32, i32
  }
  func.func @transform_2(%arg0: i32, %arg1: i32) -> (i32, i32, i32) {
    %c0_i32 = arith.constant 0 : i32
    %c0_i32_0 = arith.constant 0 : i32
    %c0_i32_1 = arith.constant 0 : i32
    return %arg0, %c0_i32, %c0_i32_0 : i32, i32, i32
  }
  func.func @transform_3(%arg0: i32, %arg1: i32) -> (i32, i32, i32) {
    %c0_i32 = arith.constant 0 : i32
    %c0_i32_0 = arith.constant 0 : i32
    %c0_i32_1 = arith.constant 0 : i32
    return %arg0, %c0_i32, %c0_i32_0 : i32, i32, i32
  }
}

</mosaic_0001>

<bundles_post_ra>
// kernel: tpu_custom_call.1
= control target key start
LH: loop header
LB: loop body
LE: loop exit
PB: predicated region body
PF: predicated region fallthrough
CT: control target
= control target key end

     0   :  { %9 = vsyncpa [#allocation9], 0  ;;  %s1108_s0 = inlined_call_operand.hbm [shape: f32[2,4,8,128], index: 0, kind: input, shape index: {}]   ;;  %s1109_s1 = inlined_call_operand.hbm [shape: f32[2,4,8,128], index: 1, kind: input, shape index: {}]   ;;  %s1110_s2 = inlined_call_operand.vmem [shape: f32[2,1,1], index: 2, kind: output, shape index: {0}]   ;;  %s1111_s3 = inlined_call_operand.vmem [shape: f32[2,1,1], index: 3, kind: output, shape index: {1}]  }
   0x1   :  { %11 = vsyncpa [#allocation9 + $0x1], 0 }
   0x2   :  { %12 = vsyncpa [#allocation11], 0 }
   0x3   :  { %14 = vsyncpa [#allocation11 + $0x1], 0  ;;  %s917_s12 = smov 0   ;;  %s919_s13 = smov 0  }
   0x4   :  { %s921_s14 = smov 0   ;;  %s923_s15 = smov 0  }
   0x5   :  { %s925_s16 = smov 0   ;;  %s927_s17 = smov 0  }
   0x6 LB: > { %s678_s18 = sadd.s32 4294967295, %s891_s17   ;;  %s32_s19 = sadd.s32 1, %s887_s16  ;;  %s891_s17 = sphi %s927_s17, %s20_s17   ;;  %s887_s16 = sphi %s925_s16, %s1119_s16   ;;  %s883_s15 = sphi %s923_s15, %s1118_s15   ;;  %s879_s14 = sphi %s921_s14, %s1117_s14   ;;  %s875_s13 = sphi %s919_s13, %s1116_s13   ;;  %s871_s12 = sphi %s917_s12, %s1115_s12  }
   0x7   : > { %p34_p0 = scmp.ge.s32.totalorder %s32_s19, 2  ;;  %s41_s20 = sadd.s32 1, %s879_s14 }
   0x8   : > { %p48_p1 = scmp.ne.s32.totalorder %s879_s14, %s875_s13  ;;  %p49_p2 = scmp.eq.s32.totalorder %s891_s17, 0 }
   0x9   : > { %s1121_s19 = smov (%p34_p0, %s32_s19), 0  ;;  %p54_p4 = scmp.ne.s32.totalorder %s875_s13, %s871_s12 }
   0xa   : > { %p953_p3 = por %p49_p2, %p48_p1  ;;  %s36_s22 = ssub.s32 %s887_s16, %s1121_s19 }
   0xb   : > { %p55_p5 = scmp.eq.s32.totalorder %s678_s18, 0  ;;  %p39_p6 = scmp.eq.s32.totalorder %s36_s22, 0 }
   0xc   : > { %p720_p8 = scmp.lt.s32.totalorder %s891_s17, 2  ;;  %s969_s25 = sand.u32 1, %s879_s14  }
   0xd   : > { %p960_p7 = por %p55_p5, %p54_p4  ;;  %s695_s26 = sshll.u32 %s887_s16, 5 }
   0xe   : > { %s966_s24 = scalar_select %p39_p6, %s879_s14, %s41_s20  }
   0xf   : > { %s682_s27 = sshll.u32 %s969_s25, 5  ;;  %s168_s30 = scalar_lea.hbm %s1108_s0, %s695_s26 }
  0x10   : > { %s169_s4 = sshll.u32 %s168_s30, 4  ;;  %s162_s5 = scalar_lea.vmem [#allocation8], %s682_s27  ;;  %s170_s4 = int_to_ptr.hbm [resolvable:$true] %s169_s4 }
  0x11   : > { %s171_s6 = sshll.u32 %s162_s5, 4  ;;  %p978_p9 = pnand %p720_p8, %p953_p3  ;;  %s172_s6 = int_to_ptr.vmem [resolvable:$true] %s171_s6 }
  0x12   : > { %p688_p10 = scmp.ge.s32.totalorder %s891_s17, 1  ;;  %p202_p11 = scmp.lt.s32.totalorder %s891_s17, 3 }
  0x13   : > { %s159_s8 = scalar_lea.sflag [#allocation9], %s969_s25  ;;  %s893_s9 = smov 128  }
  0x14   : > { %s894_s10 = smov 8   ;;  %p203_p12 = pnand %p688_p10, %p202_p11 }
  0x15   : > { %716 = dma.hbm_to_vmem [thread:$0]  (!%p978_p9), %s170_s4, 512, %s172_s6, %s159_s8, %s893_s9, %s893_s9, %s894_s10  }
  0x16   : > { %s191_s18 = scalar_lea.hbm %s1109_s1, %s695_s26  ;;  %s185_s21 = scalar_lea.vmem [#allocation10], %s682_s27 }
  0x17   : > { %s192_s20 = sshll.u32 %s191_s18, 4  ;;  %s194_s22 = sshll.u32 %s185_s21, 4  ;;  %s193_s20 = int_to_ptr.hbm [resolvable:$true] %s192_s20  ;;  %s195_s22 = int_to_ptr.vmem [resolvable:$true] %s194_s22 }
  0x18   : > { %s182_s28 = scalar_lea.sflag [#allocation11], %s969_s25  ;;  %206 = sbr.rel (%p203_p12) target bundleno = 465 (0x1d1), region = 28 }
  0x19   : > { %719 = dma.hbm_to_vmem [thread:$0]  (!%p978_p9), %s193_s20, 512, %s195_s22, %s182_s28, %s893_s9, %s893_s9, %s894_s10  }
  0x1a   : > { %s208_s29 = sand.u32 (!%p203_p12), 1, %s875_s13  }
  0x1b   : > { %s689_s30 = sshll.u32 (!%p203_p12), %s208_s29, 5  ;;  %s209_s5 = scalar_lea.sflag (!%p203_p12), [#allocation9], %s208_s29 }
  0x1c   : > { %s212_s4 = scalar_lea.vmem (!%p203_p12), [#allocation8], %s689_s30 }
  0x1d   : > { %862 = dma.done.wait (%p960_p7), %s209_s5, 512  }
  0x1e   : > { %864 = vsyncadd (%p960_p7), %s209_s5, 4294966784  ;;  %s219_s26 = scalar_lea.sflag [#allocation11], %s208_s29  ;;  %s222_s27 = scalar_lea.vmem [#allocation10], %s689_s30 }
  0x1f   : > { %866 = dma.done.wait (%p960_p7), %s219_s26, 512  }
  0x20   : > { %868 = vsyncadd (%p960_p7), %s219_s26, 4294966784  ;;  %v895_v0 = vmov 0.0   ;;  %v1008_v1 = vld [vmem:[%s222_s27] sm:$0xff]  ;;  %v1010_v2 = vld [vmem:[%s222_s27 + $0x8] sm:$0xff]  ;;  %vm309_vm0 = vcmask 1041409   ;;  %vm311_vm1 = vcmask 1042434  }
  0x21   : > { %264 = vst [vmem:[#allocation4] sm:$0xf] %v895_v0  ;;  %v1012_v3 = vld [vmem:[%s222_s27 + $0x10] sm:$0xff]  ;;  %v1014_v4 = vld [vmem:[%s222_s27 + $0x18] sm:$0xff]  ;;  %v354_v5 = vrot.slane %v1008_v1, 4  ;;  %v360_v6 = vrot.slane %v1010_v2, 4 }
  0x22   : > { %262 = vst [vmem:[#allocation2] sm:$0xf] %v895_v0  ;;  %v366_v7 = vrot.slane %v1012_v3, 4  ;;  %v372_v8 = vrot.slane %v1014_v4, 4  ;;  %v1020_v9 = vld [vmem:[%s212_s4] sm:$0xff]  ;;  %v1022_v10 = vld [vmem:[%s212_s4 + $0x8] sm:$0xff] }
  0x23   : > { %263 = vst [vmem:[#allocation3] sm:$0xf] %v895_v0  ;;  %v1024_v11 = vld [vmem:[%s212_s4 + $0x10] sm:$0xff]  ;;  %v355_v12 = vadd.f32 %v354_v5, %v1008_v1  ;;  %v361_v13 = vadd.f32 %v360_v6, %v1010_v2  ;;  %v1029_v15 = vld [vmem:[%s212_s4 + $0x18] sm:$0xff]  ;;  %v319_v16 = vrot.slane %v1020_v9, 4  ;;  %vm313_vm2 = vcmask 1043459  }
  0x24   : > { %265 = vst [vmem:[#allocation5] sm:$0x1] %v895_v0  ;;  %v367_v14 = vadd.f32 %v366_v7, %v1012_v3  ;;  %v373_v17 = vadd.f32 %v372_v8, %v1014_v4  ;;  %v325_v18 = vrot.slane %v1022_v10, 4  ;;  %v331_v19 = vrot.slane %v1024_v11, 4  ;;  %s896_s10 = smov 1e-05  }
  0x25   : > { %266 = vst [vmem:[#allocation6] sm:$0x1] %v895_v0  ;;  %v337_v20 = vrot.slane %v1029_v15, 4  ;;  %v356_v21 = vrot.slane %v355_v12, 2  ;;  %v362_v22 = vrot.slane %v361_v13, 2  ;;  %v320_v24 = vadd.f32 %v319_v16, %v1020_v9  ;;  %p252_p13 = scmp.lt.s32.totalorder %s883_s15, 1 }
  0x26   : > { %267 = vst [vmem:[#allocation7] sm:$0x1] %v895_v0  ;;  %v368_v23 = vrot.slane %v367_v14, 2  ;;  %v374_v25 = vrot.slane %v373_v17, 2  ;;  %v326_v26 = vadd.f32 %v325_v18, %v1022_v10  ;;  %v332_v27 = vadd.f32 %v331_v19, %v1024_v11 }
  0x27   : > { %v338_v28 = vadd.f32 %v337_v20, %v1029_v15  ;;  %v357_v29 = vadd.f32 %v356_v21, %v355_v12  ;;  %v363_v30 = vadd.f32 %v362_v22, %v361_v13  ;;  %v321_v32 = vrot.slane %v320_v24, 2  ;;  %s1123_s15 = smov (!%p252_p13, %s883_s15), 1 }
  0x28   : > { %v369_v31 = vadd.f32 %v368_v23, %v367_v14  ;;  %v375_v33 = vadd.f32 %v374_v25, %v373_v17  ;;  %v327_v34 = vrot.slane %v326_v26, 2  ;;  %v333_v35 = vrot.slane %v332_v27, 2  ;;  %v353_v53 = vld [vmem:[#allocation4] sm:$0xf]  ;;  %s254_s29 = scalar_lea.vmem %s1110_s2, %s1123_s15  ;;  %s257_s26 = scalar_lea.vmem %s1111_s3, %s1123_s15 }
  0x29   : > { %v339_v36 = vrot.slane %v338_v28, 2  ;;  %v358_v37 = vrot.slane %v357_v29, 1  ;;  %v364_v38 = vrot.slane %v363_v30, 1  ;;  %v322_v40 = vadd.f32 %v321_v32, %v320_v24 }
  0x2a   : > { %v370_v39 = vrot.slane %v369_v31, 1  ;;  %v376_v41 = vrot.slane %v375_v33, 1  ;;  %v328_v42 = vadd.f32 %v327_v34, %v326_v26  ;;  %v334_v43 = vadd.f32 %v333_v35, %v332_v27  ;;  %v318_v8 = vld [vmem:[#allocation3] sm:$0xf] }
  0x2b   : > { %v340_v44 = vadd.f32 %v339_v36, %v338_v28  ;;  %v359_v45 = vadd.f32 %v358_v37, %v357_v29  ;;  %v365_v46 = vadd.f32 %v364_v38, %v363_v30  ;;  %v323_v48 = vrot.slane %v322_v40, 1 }
  0x2c   : > { %v371_v47 = vadd.f32 %v370_v39, %v369_v31  ;;  %v377_v49 = vadd.f32 %v376_v41, %v375_v33  ;;  %v329_v50 = vrot.slane %v328_v42, 1  ;;  %v335_v51 = vrot.slane %v334_v43, 1 }
  0x2d   : > { %v341_v52 = vrot.slane %v340_v44, 1  ;;  %v382_v54 = vsel %vm309_vm0, %v365_v46, %v359_v45  ;;  %v324_v55 = vadd.f32 %v323_v48, %v322_v40  ;;  %v277_v56 = vmul.f32 %v1008_v1, %v1020_v9 }
  0x2e   : > { %v278_v57 = vmul.f32 %v1010_v2, %v1022_v10  ;;  %v383_v58 = vsel %vm311_vm1, %v371_v47, %v382_v54  ;;  %v330_v59 = vadd.f32 %v329_v50, %v328_v42  ;;  %v336_v60 = vadd.f32 %v335_v51, %v334_v43  ;;  %v276_v42 = vld [vmem:[#allocation2] sm:$0xf] }
  0x2f   : > { %v342_v61 = vadd.f32 %v341_v52, %v340_v44  ;;  %v384_v62 = vsel %vm313_vm2, %v377_v49, %v383_v58  ;;  %v279_v63 = vmul.f32 %v1012_v3, %v1024_v11  ;;  %v280_v5 = vmul.f32 %v1014_v4, %v1029_v15 }
  0x30   : > { %v281_v6 = vrot.slane %v277_v56, 4  ;;  %v386_v7 = vadd.f32 %v384_v62, %v353_v53  ;;  %v347_v12 = vsel %vm309_vm0, %v330_v59, %v324_v55  ;;  %v287_v13 = vrot.slane %v278_v57, 4 }
  0x31   : > { %v348_v14 = vsel %vm311_vm1, %v336_v60, %v347_v12  ;;  %v293_v17 = vrot.slane %v279_v63, 4  ;;  %v299_v18 = vrot.slane %v280_v5, 4  ;;  %vm444_vm3 = vcmask 1043456  }
  0x32   : > { %v282_v16 = vadd.f32 %v281_v6, %v277_v56  ;;  %387 = vst [vmem:[#allocation4] sm:$0xf] %v386_v7  ;;  %v349_v19 = vsel %vm313_vm2, %v342_v61, %v348_v14  ;;  %v288_v20 = vadd.f32 %v287_v13, %v278_v57  ;;  %v396_v51 = vlaneseq  ;;  %v422_v14 = vld [vmem:[#allocation6] sm:$0x1] }
  0x33   : > { %v351_v21 = vadd.f32 %v349_v19, %v318_v8  ;;  %v294_v23 = vadd.f32 %v293_v17, %v279_v63  ;;  %v300_v24 = vadd.f32 %v299_v18, %v280_v5  ;;  %v388_v52 = vadd.f32 %v1022_v10, %v1020_v9 }
  0x34   : > { %v283_v22 = vrot.slane %v282_v16, 2  ;;  %v289_v25 = vrot.slane %v288_v20, 2  ;;  %v397_v53 = vshrl.u32 %v396_v51, 7  ;;  %v399_v55 = vand.u32 127, %v396_v51 }
  0x35   : > { %352 = vst [vmem:[#allocation3] sm:$0xf] %v351_v21  ;;  %v295_v27 = vrot.slane %v294_v23, 2  ;;  %v301_v28 = vrot.slane %v300_v24, 2  ;;  %v389_v54 = vadd.f32 %v388_v52, %v1024_v11  ;;  %v391_v59 = vadd.f32 %v1010_v2, %v1008_v1  ;;  %v412_v21 = vld [vmem:[#allocation5] sm:$0x1] }
  0x36   : > { %v284_v26 = vadd.f32 %v283_v22, %v282_v16  ;;  %v290_v29 = vadd.f32 %v289_v25, %v288_v20  ;;  %v403_v56 = vmul.u32 128, %v397_v53  ;;  %v431_v22 = vld [vmem:[#allocation7] sm:$0x1]  ;;  %vm498_vm9 = vcmask 1040384  }
  0x37   : > { %v296_v31 = vadd.f32 %v295_v27, %v294_v23  ;;  %v302_v32 = vadd.f32 %v301_v28, %v300_v24  ;;  %v390_v57 = vadd.f32 %v389_v54, %v1029_v15  ;;  %v392_v60 = vadd.f32 %v391_v59, %v1012_v3 }
  0x38   : > { %v285_v30 = vrot.slane %v284_v26, 1  ;;  %v291_v33 = vrot.slane %v290_v29, 1  ;;  %v404_v58 = vadd.s32 %v403_v56, %v399_v55  ;;  %vm474_vm14 = vcmask 3072  }
  0x39   : > { %v443_v34 = vld [vmem:[#allocation4] sm:$0xf]  ;;  %v297_v36 = vrot.slane %v296_v31, 1  ;;  %v303_v37 = vrot.slane %v302_v32, 1  ;;  %vm394_vm4 = vcmp.eq.f32.partialorder %v390_v57, 0.0  ;;  %v393_v9 = vadd.f32 %v392_v60, %v1014_v4 }
  0x3a   : > { %v286_v35 = vadd.f32 %v285_v30, %v284_v26  ;;  %v445_v38 = vsel %vm444_vm3, %v443_v34, 0.0  ;;  %v292_v39 = vadd.f32 %v291_v33, %v290_v29  ;;  %vm405_vm5 = vcmp.lt.s32.totalorder %v404_v58, 256 }
  0x3b   : > { %446 = vadd.xlane.f32.xlu0 %v445_v38  ;;  %v298_v40 = vadd.f32 %v297_v36, %v296_v31  ;;  %v304_v41 = vadd.f32 %v303_v37, %v302_v32  ;;  %vm406_vm6 = vmand %vm394_vm4, %vm405_vm5  ;;  %vm395_vm7 = vcmp.eq.f32.partialorder %v393_v9, 0.0 }
  0x3c   : > { %v310_v43 = vsel %vm309_vm0, %v292_v39, %v286_v35  ;;  %v452_v44 = vld [vmem:[#allocation3] sm:$0xf]  ;;  %v691_v61 = vsel %vm406_vm6, 1.0, %v895_v0  ;;  %vm407_vm8 = vmand %vm395_vm7, %vm405_vm5 }
  0x3d   : > { %v312_v45 = vsel %vm311_vm1, %v298_v40, %v310_v43  ;;  %v453_v48 = vsel %vm444_vm3, %v452_v44, 0.0  ;;  %v423_v10 = vrot.slane %v691_v61, 4  ;;  %v692_v62 = vsel %vm407_vm8, 1.0, %v895_v0 }
  0x3e   : > { %v314_v46 = vsel %vm313_vm2, %v304_v41, %v312_v45  ;;  %v413_v63 = vmul.f32 %v692_v62, %v691_v61  ;;  %v432_v1 = vrot.slane %v692_v62, 4 }
  0x3f   : > { %v316_v47 = vadd.f32 %v314_v46, %v276_v42  ;;  %v424_v11 = vadd.f32 %v691_v61, %v423_v10 }
  0x40   : > { %v414_v6 = vrot.slane %v413_v63, 4  ;;  %v433_v8 = vadd.f32 %v692_v62, %v432_v1 }
  0x41   : > { %317 = vst [vmem:[#allocation2] sm:$0xf] %v316_v47  ;;  %v425_v15 = vrot.slane %v424_v11, 2 }
  0x42   : > { %v415_v7 = vadd.f32 %v414_v6, %v413_v63  ;;  %v434_v13 = vrot.slane %v433_v8, 2 }
  0x43   : > { %454 = vadd.xlane.f32.xlu0 %v453_v48  ;;  %v426_v5 = vadd.f32 %v425_v15, %v424_v11 }
  0x44   : > { %v416_v12 = vrot.slane %v415_v7, 2  ;;  %v435_v17 = vadd.f32 %v434_v13, %v433_v8 }
  0x45   : > { %v427_v2 = vrot.slane %v426_v5, 1 }
  0x46   : > { %v417_v4 = vadd.f32 %v416_v12, %v415_v7  ;;  %v436_v19 = vrot.slane %v435_v17, 1 }
  0x47   : > { %v428_v3 = vadd.f32 %v427_v2, %v426_v5 }
  0x48   : > { %v448_v49 = vld [vmem:[#allocation2] sm:$0xf]  ;;  %v418_v18 = vrot.slane %v417_v4, 1  ;;  %v437_v0 = vadd.f32 %v436_v19, %v435_v17 }
  0x49   : > { %v449_v50 = vsel %vm444_vm3, %v448_v49, 0.0  ;;  %v429_v16 = vadd.f32 %v428_v3, %v422_v14  ;;  %vm555_vm3 = vcmask 0  }
  0x4a   : > { %450 = vadd.xlane.f32.xlu1 %v449_v50  ;;  %v419_v20 = vadd.f32 %v418_v18, %v417_v4  ;;  %v438_v24 = vadd.f32 %v437_v0, %v431_v22 }
  0x4b   : > { %430 = vst [vmem:[#allocation6] sm:$0x1] %v429_v16 }
  0x4c   : > { %v420_v23 = vadd.f32 %v419_v20, %v412_v21  ;;  %439 = vst [vmem:[#allocation7] sm:$0x1] %v438_v24 }
  0x4e   : > { %421 = vst [vmem:[#allocation5] sm:$0x1] %v420_v23 }
  0x52   : > { %v509_v25 = vld [vmem:[#allocation6] sm:$0x1] }
  0x53   : > { %v510_v26 = vsel %vm498_vm9, %v509_v25, 0.0  ;;  %v520_v48 = vld [vmem:[#allocation7] sm:$0x1] }
  0x54   : > { %511 = vadd.xlane.f32.xlu0 %v510_v26  ;;  %v521_v50 = vsel %vm498_vm9, %v520_v48, 0.0 }
  0x55   : > { %v497_v47 = vld [vmem:[#allocation5] sm:$0x1] }
  0x56   : > { %v499_v49 = vsel %vm498_vm9, %v497_v47, 0.0 }
  0xae   : > { %v447_v27 = vpop.xlane.xlu0 %446 }
  0xaf   : > { %v456_v28 = vmul.f32 %v447_v27, %v447_v27 }
  0xb1   : > { %v457_v29 = vmax.f32 %v456_v28, 1e-05 }
  0xb3   : > { %773 = vrcp.f32 %v457_v29  ;;  %v469_v33 = vand.u32 2147483648, %v457_v29  ;;  %v467_v35 = vand.u32 2147483647, %v457_v29  ;;  %vm463_vm11 = vweird.f32 %v457_v29 }
  0xb5   : > { %v470_v38 = vor.u32 1.1754944e-38, %v469_v33  ;;  %vm468_vm13 = vcmp.eq.f32.partialorder %v467_v35, 8.507059e+37 }
  0xb6   : > { %v455_v36 = vpop.xlane.xlu0 %454 }
  0xb7   : > { %v485_v40 = vadd.f32 %v455_v36, %v447_v27 }
  0xb9   : > { %v774_v30 = vpop.eup %773 }
  0xba   : > { %v459_v31 = vmul.f32 %v774_v30, %v457_v29  ;;  %vm464_vm10 = vweird.f32 %v774_v30 }
  0xbb   : > { %vm465_vm12 = vmor %vm463_vm11, %vm464_vm10 }
  0xbc   : > { %v460_v32 = vsub.f32 1.0, %v459_v31 }
  0xbd   : > { %v451_v39 = vpop.xlane.xlu1 %450 }
  0xbe   : > { %v461_v34 = vmul.f32 %v774_v30, %v460_v32 }
  0xc0   : > { %v462_v37 = vadd.f32 %v774_v30, %v461_v34 }
  0xc2   : > { %v466_v41 = vsel %vm465_vm12, %v774_v30, %v462_v37 }
  0xc3   : > { %v471_v42 = vsel %vm468_vm13, %v470_v38, %v466_v41 }
  0xc4   : > { %v473_v43 = vmul.f32 %v471_v42, %v451_v39  ;;  %v486_v44 = vmul.f32 %v485_v40, %v471_v42 }
  0xc6   : > { %v487_v45 = vsel %vm474_vm14, %v486_v44, 0.0  ;;  %v475_v46 = vsel %vm474_vm14, %v473_v43, 0.0 }
  0xc7   : > { %488 = vadd.xlane.f32.xlu2 %v487_v45  ;;  %476 = vadd.xlane.f32.xlu1 %v475_v46  ;;  %v512_v51 = vpop.xlane.xlu0 %511 }
  0xc8   : > { %v513_v54 = vrot.slane %v512_v51, 4 }
  0xca   : > { %v514_v59 = vadd.f32 %v513_v54, %v512_v51 }
  0xcc   : > { %v515_v11 = vrot.slane %v514_v59, 2 }
  0xce   : > { %v516_v12 = vadd.f32 %v515_v11, %v514_v59 }
  0xcf   : > { %500 = vadd.xlane.f32.xlu2 %v499_v49  ;;  %522 = vadd.xlane.f32.xlu1 %v521_v50 }
  0xd0   : > { %v517_v17 = vrot.slane %v516_v12, 1 }
  0xd2   : > { %v518_v21 = vadd.f32 %v517_v17, %v516_v12 }
 0x13a   : > { %v489_v52 = vpop.xlane.xlu2 %488  ;;  %v477_v53 = vpop.xlane.xlu1 %476 }
 0x13b   : > { %v490_v55 = vrot.slane %v489_v52, 4  ;;  %v478_v56 = vrot.slane %v477_v53, 4 }
 0x13d   : > { %v491_v57 = vadd.f32 %v490_v55, %v489_v52  ;;  %v479_v58 = vadd.f32 %v478_v56, %v477_v53 }
 0x13f   : > { %v492_v60 = vrot.slane %v491_v57, 2  ;;  %v480_v61 = vrot.slane %v479_v58, 2 }
 0x141   : > { %v481_v9 = vadd.f32 %v480_v61, %v479_v58  ;;  %v493_v10 = vadd.f32 %v492_v60, %v491_v57 }
 0x142   : > { %v501_v62 = vpop.xlane.xlu2 %500  ;;  %v523_v15 = vpop.xlane.xlu1 %522 }
 0x143   : > { %v502_v63 = vrot.slane %v501_v62, 4  ;;  %v524_v5 = vrot.slane %v523_v15, 4  ;;  %v482_v6 = vrot.slane %v481_v9, 1  ;;  %v494_v1 = vrot.slane %v493_v10, 1 }
 0x145   : > { %v503_v2 = vadd.f32 %v502_v63, %v501_v62  ;;  %v525_v7 = vadd.f32 %v524_v5, %v523_v15  ;;  %v483_v8 = vadd.f32 %v482_v6, %v481_v9  ;;  %v495_v3 = vadd.f32 %v494_v1, %v493_v10 }
 0x147   : > { %v504_v13 = vrot.slane %v503_v2, 2  ;;  %v526_v14 = vrot.slane %v525_v7, 2  ;;  %697 = vpush %v483_v8 }
 0x148   : > { %699 = vpush %v495_v3 }
 0x149   : > { %v505_v16 = vadd.f32 %v504_v13, %v503_v2  ;;  %v527_v4 = vadd.f32 %v526_v14, %v525_v7 }
 0x14b   : > { %v506_v18 = vrot.slane %v505_v16, 1  ;;  %v528_v19 = vrot.slane %v527_v4, 1 }
 0x14d   : > { %v507_v20 = vadd.f32 %v506_v18, %v505_v16  ;;  %v529_v0 = vadd.f32 %v528_v19, %v527_v4 }
 0x14f   : > { %701 = vpush %v507_v20 }
 0x150   : > { %703 = vpush %v518_v21 }
 0x151   : > { %705 = vpush %v529_v0 }
 0x178   : > { %s1073_s23 = spop %697 }
 0x179   : > { %s1075_s25 = spop %699 }
 0x180   : > { %s1077_s6 = spop %701 }
 0x181   : > { %s704_s7 = spop %703 }
 0x182   : > { %s706_s8 = spop %705 }
 0x183   : > { %s531_s9 = smul.f32 %s706_s8, %s706_s8  ;;  %s551_s12 = sadd.f32 %s706_s8, %s704_s7 }
 0x185   : > { %s532_s11 = smax.f32 %s896_s10, %s531_s9 }
 0x186   : > { %v533_v22 = vstv %s532_s11 }
 0x187   : > { %775 = vrcp.f32 %v533_v22  ;;  %v545_v26 = vand.u32 2147483648, %v533_v22  ;;  %v543_v28 = vand.u32 2147483647, %v533_v22  ;;  %vm539_vm0 = vweird.f32 %v533_v22 }
 0x189   : > { %v546_v30 = vor.u32 1.1754944e-38, %v545_v26  ;;  %vm544_vm2 = vcmp.eq.f32.partialorder %v543_v28, 8.507059e+37 }
 0x18d   : > { %v776_v23 = vpop.eup %775 }
 0x18e   : > { %v535_v24 = vmul.f32 %v776_v23, %v533_v22  ;;  %vm540_vm15 = vweird.f32 %v776_v23 }
 0x18f   : > { %vm541_vm1 = vmor %vm539_vm0, %vm540_vm15 }
 0x190   : > { %v536_v25 = vsub.f32 1.0, %v535_v24 }
 0x192   : > { %v537_v27 = vmul.f32 %v776_v23, %v536_v25 }
 0x194   : > { %v538_v29 = vadd.f32 %v776_v23, %v537_v27 }
 0x196   : > { %v542_v31 = vsel %vm541_vm1, %v776_v23, %v538_v29 }
 0x197   : > { %v547_v32 = vsel %vm544_vm2, %v546_v30, %v542_v31 }
 0x198   : > { %707 = vpush %v547_v32 }
 0x1c9   : > { %s708_s18 = spop %707 }
 0x1ca   : > { %s549_s20 = smul.f32 %s708_s18, %s1077_s6 }
 0x1cb   : > { %s552_s21 = smul.f32 %s708_s18, %s551_s12 }
 0x1cc   : > { %s550_s30 = sadd.f32 %s1073_s23, %s549_s20 }
 0x1cd   : > { %s553_s27 = sadd.f32 %s1075_s25, %s552_s21 }
 0x1ce   : > { %v554_v33 = vstv %s550_s30 }
 0x1cf   : > { %556 = vst.msk [vmem:[%s254_s29] sm:$0x1] %vm555_vm3, %v554_v33  ;;  %v557_v34 = vstv %s553_s27 }
 0x1d0   : > { %558 = vst.msk [vmem:[%s257_s26] sm:$0x1] %vm555_vm3, %v557_v34 }
 0x1d1 PF: > { %s20_s17 = sadd.s32 1, %s891_s17   ;;  %s1115_s12 = smov %s875_s13 }
 0x1d2   : > { %p17_p0 = scmp.ge.s32.totalorder %s20_s17, 4   ;;  %s1116_s13 = smov %s879_s14 }
 0x1d3   : > { %s1117_s14 = smov %s966_s24  ;;  %s1118_s15 = smov %s887_s16 }
 0x1d4   : > { %s1119_s16 = smov %s1121_s19  ;;  %19 = sbr.rel (!%p17_p0) target bundleno = 6 (0x6), region = 101 }
 0x1d9   :  { %588 = vsyncpa [#allocation9], 1 }
 0x1da   :  { %590 = vsyncpa [#allocation9 + $0x1], 1 }
 0x1db   :  { %591 = vsyncpa [#allocation11], 1 }
 0x1dc   :  { %593 = vsyncpa [#allocation11 + $0x1], 1 }

</bundles_post_ra>
